<compile_context>
chip_gen: v7x
topology: tpu7x:2x2x1
jax: 0.10.0
libtpu: 0.0.40
codegen_flags: <defaults>
</compile_context>

<pallas_src>
import jax
import jax.numpy as jnp
from jax.experimental import pallas as pl
from jax.experimental.pallas import tpu as pltpu

_LANE = 128
_TILE_BYTE_BUDGET = 6 * 1024 * 1024      # target per-grid-step VMEM footprint
_VMEM_LIMIT_BYTES = 32 * 1024 * 1024     # explicit scoped-VMEM limit (v7x-safe)
_MIN_GRID_STEPS = 4                      # pipeline overlap + v7x dual-TC sharding
_MIN_PALLAS_ELEMS = 64 * 1024            # below this, XLA's fused softmax wins
_COL_TILE = 2048                         # column tile width for the long-row path
_F32_TEMPS = 3                           # in-kernel f32 temporaries per element


# ---------------------------------------------------------------------------
# Trace-time shape helpers.
# ---------------------------------------------------------------------------
def _round_up(x, m):
    return ((x + m - 1) // m) * m


def _cdiv(a, b):
    return -(-a // b)


def _sublane(*dtypes):
    """Second-minor tile granularity covering the most-packed operand."""
    min_item = min(jnp.dtype(d).itemsize for d in dtypes)
    return {1: 32, 2: 16}.get(min_item, 8)


def _row_bytes(n, dtypes):
    """VMEM bytes per row for one grid step: double-buffered I/O + f32 temps."""
    n_vmem = _round_up(max(n, _LANE), _LANE)          # internal lane padding
    io = sum(jnp.dtype(d).itemsize for d in dtypes)   # scores + out (+ mask)
    return n_vmem * (2 * io + 4 * _F32_TEMPS)


def _pick_tb(batch, bytes_per_row, sublane):
    """Row-tile size: fits the VMEM budget, keeps >= _MIN_GRID_STEPS programs."""
    tb = max(sublane, (_TILE_BYTE_BUDGET // bytes_per_row) // sublane * sublane)
    cap = max(sublane, _round_up(_cdiv(batch, _MIN_GRID_STEPS), sublane))
    tb = min(tb, cap)
    return batch if tb >= batch else tb   # full-extent block is always legal


# ---------------------------------------------------------------------------
# Row-block path: each block is (tb, N); the whole row lives in one block so
# the softmax reduction stays entirely on-chip.
# ---------------------------------------------------------------------------
def _softmax_rows(s):
    m = jnp.max(s, axis=-1, keepdims=True)
    e = jnp.exp(s - m)
    return e / jnp.sum(e, axis=-1, keepdims=True)


def _rowblock_kernel(scores_ref, out_ref):
    s = scores_ref[...].astype(jnp.float32)
    out_ref[...] = _softmax_rows(s).astype(out_ref.dtype)


def _rowblock_masked_kernel(scores_ref, mask_ref, out_ref):
    s = scores_ref[...].astype(jnp.float32)
    s = jnp.where(mask_ref[...] != 0, s, jnp.float32(-jnp.inf))
    out_ref[...] = _softmax_rows(s).astype(out_ref.dtype)


def _softmax_rowblock(scores, mask):
    B, N = scores.shape
    dtypes = [scores.dtype, scores.dtype] + ([mask.dtype] if mask is not None else [])
    tb = _pick_tb(B, _row_bytes(N, dtypes), _sublane(*dtypes))
    spec = pl.BlockSpec((tb, N), lambda i: (i, 0))
    operands = (scores,) if mask is None else (scores, mask)
    kernel = _rowblock_kernel if mask is None else _rowblock_masked_kernel
    return pl.pallas_call(
        kernel,
        out_shape=jax.ShapeDtypeStruct((B, N), scores.dtype),
        grid_spec=pltpu.PrefetchScalarGridSpec(
            num_scalar_prefetch=0,
            grid=(_cdiv(B, tb),),
            in_specs=[spec] * len(operands),
            out_specs=spec,
        ),
        compiler_params=pltpu.CompilerParams(
            dimension_semantics=("parallel",),
            vmem_limit_bytes=_VMEM_LIMIT_BYTES,
        ),
    )(*operands)


# ---------------------------------------------------------------------------
# Long-row path: two-pass online softmax over column tiles.
#   Pass 1: running max m and running sum-of-exp l per row (column axis is the
#           sequential "arbitrary" axis; VMEM scratch carries the state).
#   Pass 2: elementwise exp(s - m) / l  (fully parallel grid).
# ---------------------------------------------------------------------------
def _make_stats_kernel(masked, n_cols, tn):
    def body(scores_ref, mask_vals, m_ref, l_ref, m_sc, l_sc):
        j = pl.program_id(1)

        @pl.when(j == 0)
        def _():
            m_sc[...] = jnp.full_like(m_sc, -jnp.inf)
            l_sc[...] = jnp.zeros_like(l_sc)

        s = scores_ref[...].astype(jnp.float32)
        # Ragged last column tile: global column index must be < n_cols.
        col = jax.lax.broadcasted_iota(jnp.int32, s.shape, 1) + j * tn
        valid = col < n_cols
        if masked:
            valid = jnp.logical_and(valid, mask_vals != 0)
        neg_inf = jnp.float32(-jnp.inf)
        s = jnp.where(valid, s, neg_inf)

        m_prev = m_sc[...]
        m_new = jnp.maximum(m_prev, jnp.max(s, axis=-1, keepdims=True))
        # Guard -inf - -inf -> NaN for rows with no valid entry seen yet.
        alpha = jnp.where(m_new == neg_inf, 0.0, jnp.exp(m_prev - m_new))
        p = jnp.where(s == neg_inf, 0.0, jnp.exp(s - m_new))
        l_sc[...] = alpha * l_sc[...] + jnp.sum(p, axis=-1, keepdims=True)
        m_sc[...] = m_new

        @pl.when(j == pl.num_programs(1) - 1)
        def _():
            m_ref[...] = m_sc[...]
            l_ref[...] = l_sc[...]

    if masked:
        def kernel(scores_ref, mask_ref, m_ref, l_ref, m_sc, l_sc):
            body(scores_ref, mask_ref[...], m_ref, l_ref, m_sc, l_sc)
    else:
        def kernel(scores_ref, m_ref, l_ref, m_sc, l_sc):
            body(scores_ref, None, m_ref, l_ref, m_sc, l_sc)
    return kernel


def _make_finalize_kernel(masked):
    def body(scores_ref, mask_vals, m_ref, l_ref, out_ref):
        s = scores_ref[...].astype(jnp.float32)
        if masked:
            s = jnp.where(mask_vals != 0, s, jnp.float32(-jnp.inf))
        p = jnp.exp(s - m_ref[...])             # masked entries -> exactly 0
        out_ref[...] = (p / l_ref[...]).astype(out_ref.dtype)

    if masked:
        def kernel(scores_ref, mask_ref, m_ref, l_ref, out_ref):
            body(scores_ref, mask_ref[...], m_ref, l_ref, out_ref)
    else:
        def kernel(scores_ref, m_ref, l_ref, out_ref):
            body(scores_ref, None, m_ref, l_ref, out_ref)
    return kernel


def _softmax_coltiled(scores, mask):
    B, N = scores.shape
    dtypes = [scores.dtype, scores.dtype] + ([mask.dtype] if mask is not None else [])
    sublane = _sublane(*dtypes)
    tn = min(_COL_TILE, _round_up(max(N, _LANE), _LANE))
    per_row = tn * (2 * sum(jnp.dtype(d).itemsize for d in dtypes) + 4 * _F32_TEMPS)
    tb = _pick_tb(B, per_row, sublane)

    grid = (_cdiv(B, tb), _cdiv(N, tn))
    tile_spec = pl.BlockSpec((tb, tn), lambda i, j: (i, j))
    stat_spec = pl.BlockSpec((tb, 1), lambda i, j: (i, 0))
    operands = (scores,) if mask is None else (scores, mask)
    masked = mask is not None

    # Pass 1: streaming row max & sum-of-exp.
    m, l = pl.pallas_call(
        _make_stats_kernel(masked, N, tn),
        out_shape=(jax.ShapeDtypeStruct((B, 1), jnp.float32),
                   jax.ShapeDtypeStruct((B, 1), jnp.float32)),
        grid_spec=pltpu.PrefetchScalarGridSpec(
            num_scalar_prefetch=0,
            grid=grid,
            in_specs=[tile_spec] * len(operands),
            out_specs=[stat_spec, stat_spec],
            scratch_shapes=[pltpu.VMEM((tb, 1), jnp.float32),
                            pltpu.VMEM((tb, 1), jnp.float32)],
        ),
        compiler_params=pltpu.CompilerParams(
            dimension_semantics=("parallel", "arbitrary"),
            vmem_limit_bytes=_VMEM_LIMIT_BYTES,
        ),
    )(*operands)

    # Pass 2: normalize (pure elementwise -> fully parallel grid).
    return pl.pallas_call(
        _make_finalize_kernel(masked),
        out_shape=jax.ShapeDtypeStruct((B, N), scores.dtype),
        grid_spec=pltpu.PrefetchScalarGridSpec(
            num_scalar_prefetch=0,
            grid=grid,
            in_specs=[tile_spec] * len(operands) + [stat_spec, stat_spec],
            out_specs=tile_spec,
        ),
        compiler_params=pltpu.CompilerParams(
            dimension_semantics=("parallel", "parallel"),
            vmem_limit_bytes=_VMEM_LIMIT_BYTES,
        ),
    )(*operands, m, l)


# ---------------------------------------------------------------------------
# Dispatch.
# ---------------------------------------------------------------------------
def _softmax_impl(scores, mask):
    B, N = scores.shape
    if B * N < _MIN_PALLAS_ELEMS:
        # Tiny problem: Pallas launch + DMA-setup overhead dominates; XLA wins.
        if mask is not None:
            scores = jnp.where(mask != 0, scores, -jnp.inf)
        return jax.nn.softmax(scores, axis=-1)
    dtypes = [scores.dtype, scores.dtype] + ([mask.dtype] if mask is not None else [])
    sublane = _sublane(*dtypes)
    if _row_bytes(N, dtypes) * sublane > _TILE_BYTE_BUDGET:
        return _softmax_coltiled(scores, mask)    # rows too long for one block
    return _softmax_rowblock(scores, mask)


_softmax_jit = jax.jit(_softmax_impl)
_softmax_coltiled_jit = jax.jit(_softmax_coltiled)


def softmax_module(scores_ui, mask=None, dim=-1):
    """JAX/Pallas equivalent of SoftmaxModule.forward.

    scores_ui: (batch_size, num_items) float array of attention logits.
    mask:      optional (batch_size, num_items) 0/1, bool, int, or float array
               (0/False = item unavailable -> exactly zero probability).
    dim:       only the last axis is supported (module default).

    Note: a fully-masked row produces NaN, exactly like the PyTorch module.
    """
    scores_ui = jnp.asarray(scores_ui)
    assert scores_ui.ndim == 2, "expected (batch_size, num_items)"
    assert dim in (-1, scores_ui.ndim - 1), "only last-axis softmax implemented"
    if mask is not None:
        mask = jnp.asarray(mask)
        if mask.dtype == jnp.bool_:
            # Cheap 1 B -> 1 B cast; int/float masks pass through at native dtype
            # and the `!= 0` compare happens in-kernel (free VPU filler).
            mask = mask.astype(jnp.int8)
    return _softmax_jit(scores_ui, mask)


# ---------------------------------------------------------------------------
# Self-test.
# ---------------------------------------------------------------------------
if __name__ == "__main__":
    key = jax.random.PRNGKey(0)
    k1, k2, k3, k4 = jax.random.split(key, 4)

    def ref_softmax(s, m=None):
        if m is not None:
            s = jnp.where(m != 0, s, -jnp.inf)
        return jax.nn.softmax(s, axis=-1)

    # --- Row-block Pallas path: non-lane-aligned N, int32 mask passed natively.
    B1, N1 = 512, 300
    scores1 = jax.random.normal(k1, (B1, N1), dtype=jnp.float32)
    mask1 = (jax.random.uniform(k2, (B1, N1)) > 0.3).astype(jnp.int32)
    mask1 = mask1.at[:, 0].set(1)                 # at least one valid item per row

    out_m = jax.block_until_ready(softmax_module(scores1, mask1))
    out_u = jax.block_until_ready(softmax_module(scores1))
    assert out_m.shape == (B1, N1) and out_u.shape == (B1, N1)
    assert jnp.allclose(out_m, ref_softmax(scores1, mask1), atol=1e-6)
    assert jnp.allclose(out_u, ref_softmax(scores1), atol=1e-6)
    assert jnp.all(jnp.where(mask1 == 0, out_m, 0.0) == 0.0)   # exact zeros

    # bool mask (wrapper converts to int8, no other extra passes)
    out_b = jax.block_until_ready(softmax_module(scores1, mask1.astype(bool)))
    assert jnp.allclose(out_b, ref_softmax(scores1, mask1), atol=1e-6)

    # --- Long-row two-pass online-softmax path, exercised directly
    #     (ragged row tiles AND ragged column tiles).
    B2, N2 = 100, 4500
    scores2 = jax.random.normal(k3, (B2, N2), dtype=jnp.float32)
    mask2 = (jax.random.uniform(k4, (B2, N2)) > 0.5).astype(jnp.int32)
    mask2 = mask2.at[:, 0].set(1)
    out2_m = jax.block_until_ready(_softmax_coltiled_jit(scores2, mask2))
    out2_u = jax.block_until_ready(_softmax_coltiled_jit(scores2, None))
    assert jnp.allclose(out2_m, ref_softmax(scores2, mask2), atol=1e-5)
    assert jnp.allclose(out2_u, ref_softmax(scores2), atol=1e-5)
    assert jnp.all(jnp.where(mask2 == 0, out2_m, 0.0) == 0.0)

    # --- Tiny input -> XLA fused-softmax fallback.
    scores3 = jax.random.normal(k1, (16, 40), dtype=jnp.float32)
    out3 = jax.block_until_ready(softmax_module(scores3))
    assert jnp.allclose(out3, ref_softmax(scores3), atol=1e-6)

    print("KERNEL_OK")
</pallas_src>

<mosaic_0001>
module attributes {stable_mosaic.version = 11 : i64} {
  func.func @_rowblock_masked_kernel(%arg0: i32, %arg1: memref<128x300xf32, #tpu.memory_space<vmem>>, %arg2: memref<128x300xi32, #tpu.memory_space<vmem>>, %arg3: memref<128x300xf32, #tpu.memory_space<vmem>>) attributes {dimension_semantics = [#tpu.dimension_semantics<parallel>], iteration_bounds = array<i64: 4>, scalar_prefetch = 0 : i64, scratch_operands = 0 : i64, tpu.core_type = #tpu.core_type<tc>, window_params = [{transform_indices = @transform_0, window_bounds = array<i64: 128, 300>}, {transform_indices = @transform_1, window_bounds = array<i64: 128, 300>}, {transform_indices = @transform_2, window_bounds = array<i64: 128, 300>}]} {
    %c0 = arith.constant 0 : index
    %c0_0 = arith.constant 0 : index
    %0 = vector.load %arg1[%c0, %c0_0] : memref<128x300xf32, #tpu.memory_space<vmem>>, vector<128x300xf32>
    %c0_1 = arith.constant 0 : index
    %c0_2 = arith.constant 0 : index
    %1 = vector.load %arg2[%c0_1, %c0_2] : memref<128x300xi32, #tpu.memory_space<vmem>>, vector<128x300xi32>
    %c0_i32 = arith.constant 0 : i32
    %2 = vector.broadcast %c0_i32 : i32 to vector<128x300xi32>
    %3 = arith.cmpi ne, %1, %2 : vector<128x300xi32>
    %cst = arith.constant 0xFF800000 : f32
    %4 = vector.broadcast %cst : f32 to vector<128x300xf32>
    %5 = arith.select %3, %0, %4 : vector<128x300xi1>, vector<128x300xf32>
    %cst_3 = arith.constant dense<0xFF800000> : vector<128xf32>
    %6 = vector.multi_reduction <maximumf>, %5, %cst_3 [1] : vector<128x300xf32> to vector<128xf32>
    %7 = vector.shape_cast %6 : vector<128xf32> to vector<128x1xf32>
    %8 = vector.broadcast %7 : vector<128x1xf32> to vector<128x300xf32>
    %9 = arith.subf %5, %8 : vector<128x300xf32>
    %10 = math.exp %9 : vector<128x300xf32>
    %cst_4 = arith.constant dense<0.000000e+00> : vector<128xf32>
    %11 = vector.multi_reduction <add>, %10, %cst_4 [1] : vector<128x300xf32> to vector<128xf32>
    %12 = vector.shape_cast %11 : vector<128xf32> to vector<128x1xf32>
    %13 = vector.broadcast %12 : vector<128x1xf32> to vector<128x300xf32>
    %14 = arith.divf %10, %13 : vector<128x300xf32>
    %c0_5 = arith.constant 0 : index
    %c0_6 = arith.constant 0 : index
    %15 = vector.load %arg3[%c0_5, %c0_6] : memref<128x300xf32, #tpu.memory_space<vmem>>, vector<128x300xf32>
    tpu.vector_store %arg3[%c0_5, %c0_6], %14 {strides = array<i32>} : memref<128x300xf32, #tpu.memory_space<vmem>>, vector<128x300xf32>,
    return
  }
  func.func @transform_0(%arg0: i32) -> (i32, i32) {
    %c0_i32 = arith.constant 0 : i32
    %c0_i32_0 = arith.constant 0 : i32
    return %arg0, %c0_i32 : i32, i32
  }
  func.func @transform_1(%arg0: i32) -> (i32, i32) {
    %c0_i32 = arith.constant 0 : i32
    %c0_i32_0 = arith.constant 0 : i32
    return %arg0, %c0_i32 : i32, i32
  }
  func.func @transform_2(%arg0: i32) -> (i32, i32) {
    %c0_i32 = arith.constant 0 : i32
    %c0_i32_0 = arith.constant 0 : i32
    return %arg0, %c0_i32 : i32, i32
  }
}

</mosaic_0001>

<bundles_post_ra>
// kernel: _softmax_impl.1
= control target key start
LH: loop header
LB: loop body
LE: loop exit
PB: predicated region body
PF: predicated region fallthrough
CT: control target
= control target key end

     0   :  { %s1029_s9 = smov 0   ;;  %s1636_s0 = inlined_call_operand.vmem [shape: f32[512,300], index: 0, kind: input, shape index: {}]   ;;  %s1637_s1 = inlined_call_operand.vmem [shape: s32[512,300], index: 1, kind: input, shape index: {}]   ;;  %s1638_s2 = inlined_call_operand.vmem [shape: f32[512,300], index: 2, kind: output, shape index: {}]  }
   0x1 LB: > { %s856_s10 = sadd.s32 4294967295, %s1012_s9   ;;  %p860_p0 = scmp.ge.s32.totalorder %s1012_s9, 1  ;;  %s1012_s9 = sphi %s1029_s9, %s12_s9  }
   0x2   : > { %p126_p1 = scmp.lt.s32.totalorder %s1012_s9, 5 }
   0x4   : > { %p127_p2 = pnand %p860_p0, %p126_p1 }
   0x5   : > { %s861_s11 = sshll.u32 (!%p127_p2), %s856_s10, 4  ;;  %vm370_vm0 = vcmask (!%p127_p2), 359424  }
   0x6   : > { %130 = sbr.rel (%p127_p2) target bundleno = 389 (0x185), region = 28  ;;  %p157_p3 = scmp.lt.s32.totalorder (!%p127_p2), %s861_s11, 63 }
   0xd   : > { %s1640_s11 = smov (!%p157_p3, %s861_s11), 63 }
   0xe   : > { %s1037_s12 = smul.u32 24, %s1640_s11 }
  0x10   : > { %s1043_s15 = scalar_lea.vmem %s1636_s0, %s1037_s12  ;;  %s1049_s18 = scalar_lea.vmem %s1637_s1, %s1037_s12 }
  0x11   : > { %v177_v0 = vld [vmem:[%s1043_s15] sm:$0xff]  ;;  %v178_v1 = vld [vmem:[%s1043_s15 + $0x8] sm:$0xff]  ;;  %v179_v2 = vld [vmem:[%s1043_s15 + $0x10] sm:$0xff]  ;;  %s1519_s21 = scalar_lea.vmem %s1638_s2, %s1037_s12 }
  0x12   : > { %v225_v3 = vld [vmem:[%s1049_s18] sm:$0xff]  ;;  %v226_v4 = vld [vmem:[%s1049_s18 + $0x8] sm:$0xff]  ;;  %v227_v5 = vld [vmem:[%s1049_s18 + $0x10] sm:$0xff] }
  0x13   : > { %vm273_vm1 = vcmp.ne.s32.totalorder %v225_v3, 0  ;;  %vm274_vm2 = vcmp.ne.s32.totalorder %v226_v4, 0  ;;  %vm275_vm3 = vcmp.ne.s32.totalorder %v227_v5, 0  ;;  %v183_v6 = vld [vmem:[%s1043_s15 + $0x30] sm:$0xff]  ;;  %v184_v7 = vld [vmem:[%s1043_s15 + $0x38] sm:$0xff]  ;;  %v185_v8 = vld [vmem:[%s1043_s15 + $0x40] sm:$0xff] }
  0x14   : > { %v1060_v9 = vsel %vm273_vm1, %v177_v0, -inf  ;;  %v1062_v10 = vsel %vm274_vm2, %v178_v1, -inf  ;;  %v1064_v11 = vsel %vm275_vm3, %v179_v2, -inf  ;;  %v231_v12 = vld [vmem:[%s1049_s18 + $0x30] sm:$0xff]  ;;  %v232_v13 = vld [vmem:[%s1049_s18 + $0x38] sm:$0xff]  ;;  %v233_v14 = vld [vmem:[%s1049_s18 + $0x40] sm:$0xff] }
  0x15   : > { %v369_v15 = vmax.f32 %v1060_v9, %v1062_v10  ;;  %v371_v16 = vsel %vm370_vm0, %v1064_v11, -inf  ;;  %vm279_vm4 = vcmp.ne.s32.totalorder %v231_v12, 0  ;;  %vm280_vm5 = vcmp.ne.s32.totalorder %v232_v13, 0  ;;  %v180_v17 = vld [vmem:[%s1043_s15 + $0x18] sm:$0xff]  ;;  %v181_v18 = vld [vmem:[%s1043_s15 + $0x20] sm:$0xff]  ;;  %v182_v19 = vld [vmem:[%s1043_s15 + $0x28] sm:$0xff] }
  0x16   : > { %vm281_vm6 = vcmp.ne.s32.totalorder %v233_v14, 0  ;;  %v1076_v20 = vsel %vm279_vm4, %v183_v6, -inf  ;;  %v1078_v21 = vsel %vm280_vm5, %v184_v7, -inf  ;;  %v228_v22 = vld [vmem:[%s1049_s18 + $0x18] sm:$0xff]  ;;  %v229_v23 = vld [vmem:[%s1049_s18 + $0x20] sm:$0xff]  ;;  %v230_v24 = vld [vmem:[%s1049_s18 + $0x28] sm:$0xff] }
  0x17   : > { %v372_v25 = vmax.f32 %v369_v15, %v371_v16  ;;  %v1083_v26 = vsel %vm281_vm6, %v185_v8, -inf  ;;  %v380_v27 = vmax.f32 %v1076_v20, %v1078_v21  ;;  %vm276_vm7 = vcmp.ne.s32.totalorder %v228_v22, 0  ;;  %v186_v28 = vld [vmem:[%s1043_s15 + $0x48] sm:$0xff]  ;;  %v187_v29 = vld [vmem:[%s1043_s15 + $0x50] sm:$0xff]  ;;  %v188_v30 = vld [vmem:[%s1043_s15 + $0x58] sm:$0xff] }
  0x18   : > { %v381_v31 = vsel %vm370_vm0, %v1083_v26, -inf  ;;  %vm277_vm8 = vcmp.ne.s32.totalorder %v229_v23, 0  ;;  %vm278_vm9 = vcmp.ne.s32.totalorder %v230_v24, 0  ;;  %v1092_v32 = vsel %vm276_vm7, %v180_v17, -inf  ;;  %v234_v33 = vld [vmem:[%s1049_s18 + $0x48] sm:$0xff]  ;;  %v235_v34 = vld [vmem:[%s1049_s18 + $0x50] sm:$0xff] }
  0x19   : > { %373 = vmax.xlane.f32.xlu0 %v372_v25  ;;  %v382_v35 = vmax.f32 %v380_v27, %v381_v31  ;;  %v1096_v36 = vsel %vm277_vm8, %v181_v18, -inf  ;;  %v1098_v37 = vsel %vm278_vm9, %v182_v19, -inf  ;;  %v236_v38 = vld [vmem:[%s1049_s18 + $0x58] sm:$0xff]  ;;  %vm282_vm10 = vcmp.ne.s32.totalorder %v234_v33, 0  ;;  %v189_v39 = vld [vmem:[%s1043_s15 + $0x60] sm:$0xff]  ;;  %v190_v40 = vld [vmem:[%s1043_s15 + $0x68] sm:$0xff] }
  0x1a   : > { %v375_v41 = vmax.f32 %v1092_v32, %v1096_v36  ;;  %v376_v42 = vsel %vm370_vm0, %v1098_v37, -inf  ;;  %vm283_vm11 = vcmp.ne.s32.totalorder %v235_v34, 0  ;;  %vm284_vm12 = vcmp.ne.s32.totalorder %v236_v38, 0  ;;  %v191_v43 = vld [vmem:[%s1043_s15 + $0x70] sm:$0xff]  ;;  %v237_v44 = vld [vmem:[%s1049_s18 + $0x60] sm:$0xff]  ;;  %v238_v45 = vld [vmem:[%s1049_s18 + $0x68] sm:$0xff] }
  0x1b   : > { %383 = vmax.xlane.f32.xlu1 %v382_v35  ;;  %v1110_v46 = vsel %vm282_vm10, %v186_v28, -inf  ;;  %v1112_v47 = vsel %vm283_vm11, %v187_v29, -inf  ;;  %v1114_v48 = vsel %vm284_vm12, %v188_v30, -inf  ;;  %v239_v49 = vld [vmem:[%s1049_s18 + $0x70] sm:$0xff]  ;;  %vm285_vm13 = vcmp.ne.s32.totalorder %v237_v44, 0  ;;  %v192_v50 = vld [vmem:[%s1043_s15 + $0x78] sm:$0xff] }
  0x1c   : > { %v377_v51 = vmax.f32 %v375_v41, %v376_v42  ;;  %v385_v52 = vmax.f32 %v1110_v46, %v1112_v47  ;;  %v386_v53 = vsel %vm370_vm0, %v1114_v48, -inf  ;;  %vm286_vm14 = vcmp.ne.s32.totalorder %v238_v45, 0  ;;  %v193_v54 = vld [vmem:[%s1043_s15 + $0x80] sm:$0xff]  ;;  %v194_v55 = vld [vmem:[%s1043_s15 + $0x88] sm:$0xff]  ;;  %v240_v56 = vld [vmem:[%s1049_s18 + $0x78] sm:$0xff] }
  0x1d   : > { %vm287_vm15 = vcmp.ne.s32.totalorder %v239_v49, 0  ;;  %v1125_v57 = vsel %vm285_vm13, %v189_v39, -inf  ;;  %v1127_v58 = vsel %vm286_vm14, %v190_v40, -inf  ;;  %v241_v59 = vld [vmem:[%s1049_s18 + $0x80] sm:$0xff]  ;;  %v242_v60 = vld [vmem:[%s1049_s18 + $0x88] sm:$0xff]  ;;  %vm288_vm1 = vcmp.ne.s32.totalorder %v240_v56, 0 }
  0x1e   : > { %378 = vmax.xlane.f32.xlu0 %v377_v51  ;;  %v387_v61 = vmax.f32 %v385_v52, %v386_v53  ;;  %v1131_v62 = vsel %vm287_vm15, %v191_v43, -inf  ;;  %v390_v63 = vmax.f32 %v1125_v57, %v1127_v58  ;;  %vm289_vm2 = vcmp.ne.s32.totalorder %v241_v59, 0  ;;  %v195_v0 = vld [vmem:[%s1043_s15 + $0x90] sm:$0xff]  ;;  %v196_v1 = vld [vmem:[%s1043_s15 + $0x98] sm:$0xff]  ;;  %v197_v2 = vld [vmem:[%s1043_s15 + $0xa0] sm:$0xff] }
  0x1f   : > { %v391_v3 = vsel %vm370_vm0, %v1131_v62, -inf  ;;  %vm290_vm3 = vcmp.ne.s32.totalorder %v242_v60, 0  ;;  %v1140_v4 = vsel %vm288_vm1, %v192_v50, -inf  ;;  %v1142_v5 = vsel %vm289_vm2, %v193_v54, -inf  ;;  %v243_v6 = vld [vmem:[%s1049_s18 + $0x90] sm:$0xff]  ;;  %v244_v7 = vld [vmem:[%s1049_s18 + $0x98] sm:$0xff] }
  0x20   : > { %388 = vmax.xlane.f32.xlu1 %v387_v61  ;;  %v392_v8 = vmax.f32 %v390_v63, %v391_v3  ;;  %v1146_v12 = vsel %vm290_vm3, %v194_v55, -inf  ;;  %v395_v13 = vmax.f32 %v1140_v4, %v1142_v5  ;;  %v245_v14 = vld [vmem:[%s1049_s18 + $0xa0] sm:$0xff]  ;;  %vm291_vm4 = vcmp.ne.s32.totalorder %v243_v6, 0  ;;  %v198_v15 = vld [vmem:[%s1043_s15 + $0xa8] sm:$0xff]  ;;  %v199_v16 = vld [vmem:[%s1043_s15 + $0xb0] sm:$0xff] }
  0x21   : > { %v396_v17 = vsel %vm370_vm0, %v1146_v12, -inf  ;;  %vm292_vm5 = vcmp.ne.s32.totalorder %v244_v7, 0  ;;  %vm293_vm6 = vcmp.ne.s32.totalorder %v245_v14, 0  ;;  %v1155_v18 = vsel %vm291_vm4, %v195_v0, -inf  ;;  %v200_v19 = vld [vmem:[%s1043_s15 + $0xb8] sm:$0xff]  ;;  %v246_v22 = vld [vmem:[%s1049_s18 + $0xa8] sm:$0xff] }
  0x22   : > { %393 = vmax.xlane.f32.xlu0 %v392_v8  ;;  %v397_v23 = vmax.f32 %v395_v13, %v396_v17  ;;  %v1159_v24 = vsel %vm292_vm5, %v196_v1, -inf  ;;  %v1161_v25 = vsel %vm293_vm6, %v197_v2, -inf  ;;  %v247_v27 = vld [vmem:[%s1049_s18 + $0xb0] sm:$0xff]  ;;  %v248_v28 = vld [vmem:[%s1049_s18 + $0xb8] sm:$0xff]  ;;  %vm294_vm7 = vcmp.ne.s32.totalorder %v246_v22, 0  ;;  %v201_v29 = vld [vmem:[%s1043_s15 + $0xc0] sm:$0xff] }
  0x23   : > { %v400_v30 = vmax.f32 %v1155_v18, %v1159_v24  ;;  %v401_v31 = vsel %vm370_vm0, %v1161_v25, -inf  ;;  %vm295_vm8 = vcmp.ne.s32.totalorder %v247_v27, 0  ;;  %vm296_vm9 = vcmp.ne.s32.totalorder %v248_v28, 0  ;;  %v202_v33 = vld [vmem:[%s1043_s15 + $0xc8] sm:$0xff]  ;;  %v203_v34 = vld [vmem:[%s1043_s15 + $0xd0] sm:$0xff]  ;;  %v249_v35 = vld [vmem:[%s1049_s18 + $0xc0] sm:$0xff] }
  0x24   : > { %398 = vmax.xlane.f32.xlu1 %v397_v23  ;;  %v1173_v38 = vsel %vm294_vm7, %v198_v15, -inf  ;;  %v1175_v39 = vsel %vm295_vm8, %v199_v16, -inf  ;;  %v1177_v40 = vsel %vm296_vm9, %v200_v19, -inf  ;;  %v250_v41 = vld [vmem:[%s1049_s18 + $0xc8] sm:$0xff]  ;;  %v251_v42 = vld [vmem:[%s1049_s18 + $0xd0] sm:$0xff]  ;;  %vm297_vm10 = vcmp.ne.s32.totalorder %v249_v35, 0 }
  0x25   : > { %v402_v43 = vmax.f32 %v400_v30, %v401_v31  ;;  %v405_v44 = vmax.f32 %v1173_v38, %v1175_v39  ;;  %v406_v45 = vsel %vm370_vm0, %v1177_v40, -inf  ;;  %vm298_vm11 = vcmp.ne.s32.totalorder %v250_v41, 0  ;;  %v204_v49 = vld [vmem:[%s1043_s15 + $0xd8] sm:$0xff]  ;;  %v205_v50 = vld [vmem:[%s1043_s15 + $0xe0] sm:$0xff]  ;;  %v206_v51 = vld [vmem:[%s1043_s15 + $0xe8] sm:$0xff] }
  0x26   : > { %vm299_vm12 = vcmp.ne.s32.totalorder %v251_v42, 0  ;;  %v1188_v52 = vsel %vm297_vm10, %v201_v29, -inf  ;;  %v1190_v53 = vsel %vm298_vm11, %v202_v33, -inf  ;;  %v252_v54 = vld [vmem:[%s1049_s18 + $0xd8] sm:$0xff]  ;;  %v253_v55 = vld [vmem:[%s1049_s18 + $0xe0] sm:$0xff]  ;;  %v254_v56 = vld [vmem:[%s1049_s18 + $0xe8] sm:$0xff] }
  0x27   : > { %403 = vmax.xlane.f32.xlu0 %v402_v43  ;;  %v407_v59 = vmax.f32 %v405_v44, %v406_v45  ;;  %v1195_v60 = vsel %vm299_vm12, %v203_v34, -inf  ;;  %v410_v61 = vmax.f32 %v1188_v52, %v1190_v53  ;;  %vm300_vm13 = vcmp.ne.s32.totalorder %v252_v54, 0  ;;  %v207_v63 = vld [vmem:[%s1043_s15 + $0xf0] sm:$0xff]  ;;  %v208_v0 = vld [vmem:[%s1043_s15 + $0xf8] sm:$0xff]  ;;  %v209_v1 = vld [vmem:[%s1043_s15 + $0x100] sm:$0xff] }
  0x28   : > { %v411_v2 = vsel %vm370_vm0, %v1195_v60, -inf  ;;  %vm301_vm14 = vcmp.ne.s32.totalorder %v253_v55, 0  ;;  %vm302_vm15 = vcmp.ne.s32.totalorder %v254_v56, 0  ;;  %v1204_v3 = vsel %vm300_vm13, %v204_v49, -inf  ;;  %v255_v6 = vld [vmem:[%s1049_s18 + $0xf0] sm:$0xff]  ;;  %v256_v7 = vld [vmem:[%s1049_s18 + $0xf8] sm:$0xff] }
  0x29   : > { %408 = vmax.xlane.f32.xlu1 %v407_v59  ;;  %v412_v8 = vmax.f32 %v410_v61, %v411_v2  ;;  %v1208_v13 = vsel %vm301_vm14, %v205_v50, -inf  ;;  %v1210_v14 = vsel %vm302_vm15, %v206_v51, -inf  ;;  %v257_v15 = vld [vmem:[%s1049_s18 + $0x100] sm:$0xff]  ;;  %vm303_vm1 = vcmp.ne.s32.totalorder %v255_v6, 0  ;;  %v210_v16 = vld [vmem:[%s1043_s15 + $0x108] sm:$0xff]  ;;  %v211_v17 = vld [vmem:[%s1043_s15 + $0x110] sm:$0xff] }
  0x2a   : > { %v415_v19 = vmax.f32 %v1204_v3, %v1208_v13  ;;  %v416_v22 = vsel %vm370_vm0, %v1210_v14, -inf  ;;  %vm304_vm2 = vcmp.ne.s32.totalorder %v256_v7, 0  ;;  %vm305_vm3 = vcmp.ne.s32.totalorder %v257_v15, 0  ;;  %v212_v23 = vld [vmem:[%s1043_s15 + $0x118] sm:$0xff]  ;;  %v258_v27 = vld [vmem:[%s1049_s18 + $0x108] sm:$0xff]  ;;  %v259_v28 = vld [vmem:[%s1049_s18 + $0x110] sm:$0xff] }
  0x2b   : > { %413 = vmax.xlane.f32.xlu0 %v412_v8  ;;  %v1222_v29 = vsel %vm303_vm1, %v207_v63, -inf  ;;  %v1224_v30 = vsel %vm304_vm2, %v208_v0, -inf  ;;  %v1226_v31 = vsel %vm305_vm3, %v209_v1, -inf  ;;  %v260_v33 = vld [vmem:[%s1049_s18 + $0x118] sm:$0xff]  ;;  %vm306_vm4 = vcmp.ne.s32.totalorder %v258_v27, 0  ;;  %v213_v34 = vld [vmem:[%s1043_s15 + $0x120] sm:$0xff] }
  0x2c   : > { %v417_v35 = vmax.f32 %v415_v19, %v416_v22  ;;  %v420_v41 = vmax.f32 %v1222_v29, %v1224_v30  ;;  %v421_v42 = vsel %vm370_vm0, %v1226_v31, -inf  ;;  %vm307_vm5 = vcmp.ne.s32.totalorder %v259_v28, 0  ;;  %v214_v43 = vld [vmem:[%s1043_s15 + $0x128] sm:$0xff]  ;;  %v215_v44 = vld [vmem:[%s1043_s15 + $0x130] sm:$0xff]  ;;  %v261_v45 = vld [vmem:[%s1049_s18 + $0x120] sm:$0xff] }
  0x2d   : > { %vm308_vm6 = vcmp.ne.s32.totalorder %v260_v33, 0  ;;  %v1237_v49 = vsel %vm306_vm4, %v210_v16, -inf  ;;  %v1239_v50 = vsel %vm307_vm5, %v211_v17, -inf  ;;  %v262_v51 = vld [vmem:[%s1049_s18 + $0x128] sm:$0xff]  ;;  %v263_v54 = vld [vmem:[%s1049_s18 + $0x130] sm:$0xff]  ;;  %vm309_vm7 = vcmp.ne.s32.totalorder %v261_v45, 0 }
  0x2e   : > { %418 = vmax.xlane.f32.xlu1 %v417_v35  ;;  %v422_v55 = vmax.f32 %v420_v41, %v421_v42  ;;  %v1243_v56 = vsel %vm308_vm6, %v212_v23, -inf  ;;  %v425_v59 = vmax.f32 %v1237_v49, %v1239_v50  ;;  %vm310_vm8 = vcmp.ne.s32.totalorder %v262_v51, 0  ;;  %v216_v61 = vld [vmem:[%s1043_s15 + $0x138] sm:$0xff]  ;;  %v217_v63 = vld [vmem:[%s1043_s15 + $0x140] sm:$0xff]  ;;  %v218_v0 = vld [vmem:[%s1043_s15 + $0x148] sm:$0xff] }
  0x2f   : > { %v426_v1 = vsel %vm370_vm0, %v1243_v56, -inf  ;;  %vm311_vm9 = vcmp.ne.s32.totalorder %v263_v54, 0  ;;  %v1252_v2 = vsel %vm309_vm7, %v213_v34, -inf  ;;  %v1254_v6 = vsel %vm310_vm8, %v214_v43, -inf  ;;  %v264_v7 = vld [vmem:[%s1049_s18 + $0x138] sm:$0xff]  ;;  %v265_v8 = vld [vmem:[%s1049_s18 + $0x140] sm:$0xff] }
  0x30   : > { %423 = vmax.xlane.f32.xlu0 %v422_v55  ;;  %v427_v15 = vmax.f32 %v425_v59, %v426_v1  ;;  %v1258_v16 = vsel %vm311_vm9, %v215_v44, -inf  ;;  %v430_v17 = vmax.f32 %v1252_v2, %v1254_v6  ;;  %v266_v19 = vld [vmem:[%s1049_s18 + $0x148] sm:$0xff]  ;;  %vm312_vm10 = vcmp.ne.s32.totalorder %v264_v7, 0  ;;  %v219_v22 = vld [vmem:[%s1043_s15 + $0x150] sm:$0xff]  ;;  %v220_v23 = vld [vmem:[%s1043_s15 + $0x158] sm:$0xff] }
  0x31   : > { %v431_v27 = vsel %vm370_vm0, %v1258_v16, -inf  ;;  %vm313_vm11 = vcmp.ne.s32.totalorder %v265_v8, 0  ;;  %vm314_vm12 = vcmp.ne.s32.totalorder %v266_v19, 0  ;;  %v1267_v28 = vsel %vm312_vm10, %v216_v61, -inf  ;;  %v221_v33 = vld [vmem:[%s1043_s15 + $0x160] sm:$0xff]  ;;  %v267_v34 = vld [vmem:[%s1049_s18 + $0x150] sm:$0xff] }
  0x32   : > { %428 = vmax.xlane.f32.xlu1 %v427_v15  ;;  %v432_v35 = vmax.f32 %v430_v17, %v431_v27  ;;  %v1271_v41 = vsel %vm313_vm11, %v217_v63, -inf  ;;  %v1273_v42 = vsel %vm314_vm12, %v218_v0, -inf  ;;  %v268_v43 = vld [vmem:[%s1049_s18 + $0x158] sm:$0xff]  ;;  %v269_v44 = vld [vmem:[%s1049_s18 + $0x160] sm:$0xff]  ;;  %vm315_vm13 = vcmp.ne.s32.totalorder %v267_v34, 0  ;;  %v222_v45 = vld [vmem:[%s1043_s15 + $0x168] sm:$0xff] }
  0x33   : > { %v435_v51 = vmax.f32 %v1267_v28, %v1271_v41  ;;  %v436_v54 = vsel %vm370_vm0, %v1273_v42, -inf  ;;  %vm316_vm14 = vcmp.ne.s32.totalorder %v268_v43, 0  ;;  %vm317_vm15 = vcmp.ne.s32.totalorder %v269_v44, 0  ;;  %v223_v55 = vld [vmem:[%s1043_s15 + $0x170] sm:$0xff]  ;;  %v224_v59 = vld [vmem:[%s1043_s15 + $0x178] sm:$0xff]  ;;  %v270_v61 = vld [vmem:[%s1049_s18 + $0x168] sm:$0xff] }
  0x34   : > { %433 = vmax.xlane.f32.xlu0 %v432_v35  ;;  %v1285_v63 = vsel %vm315_vm13, %v219_v22, -inf  ;;  %v1287_v0 = vsel %vm316_vm14, %v220_v23, -inf  ;;  %v1289_v1 = vsel %vm317_vm15, %v221_v33, -inf  ;;  %v271_v7 = vld [vmem:[%s1049_s18 + $0x170] sm:$0xff]  ;;  %v272_v8 = vld [vmem:[%s1049_s18 + $0x178] sm:$0xff]  ;;  %vm318_vm1 = vcmp.ne.s32.totalorder %v270_v61, 0 }
  0x35   : > { %v437_v15 = vmax.f32 %v435_v51, %v436_v54  ;;  %v440_v17 = vmax.f32 %v1285_v63, %v1287_v0  ;;  %v441_v19 = vsel %vm370_vm0, %v1289_v1, -inf  ;;  %vm319_vm2 = vcmp.ne.s32.totalorder %v271_v7, 0 }
  0x36   : > { %vm320_vm3 = vcmp.ne.s32.totalorder %v272_v8, 0  ;;  %v1297_v27 = vsel %vm318_vm1, %v222_v45, -inf  ;;  %v1299_v22 = vsel %vm319_vm2, %v223_v55, -inf }
  0x37   : > { %438 = vmax.xlane.f32.xlu1 %v437_v15  ;;  %v442_v23 = vmax.f32 %v440_v17, %v441_v19  ;;  %v1301_v33 = vsel %vm320_vm3, %v224_v59, -inf  ;;  %v445_v34 = vmax.f32 %v1297_v27, %v1299_v22 }
  0x38   : > { %v446_v35 = vsel %vm370_vm0, %v1301_v33, -inf }
  0x39   : > { %443 = vmax.xlane.f32.xlu0 %v442_v23  ;;  %v447_v43 = vmax.f32 %v445_v34, %v446_v35 }
  0x3b   : > { %448 = vmax.xlane.f32.xlu1 %v447_v43 }
  0xa6   : > { %v374_v44 = vpop.xlane.xlu0 %373 }
  0xa7   : > { %v450_v51 = vsub.f32 %v1060_v9, %v374_v44  ;;  %v451_v45 = vsub.f32 %v1062_v10, %v374_v44  ;;  %v452_v54 = vsub.f32 %v1064_v11, %v374_v44 }
  0xa8   : > { %v384_v55 = vpop.xlane.xlu1 %383 }
  0xa9   : > { %v498_v61 = vmul.f32 1.442695, %v450_v51  ;;  %v500_v59 = vmul.f32 1.442695, %v451_v45  ;;  %v502_v7 = vmul.f32 1.442695, %v452_v54  ;;  %v456_v8 = vsub.f32 %v1076_v20, %v384_v55 }
  0xaa   : > { %v457_v15 = vsub.f32 %v1078_v21, %v384_v55  ;;  %v458_v17 = vsub.f32 %v1083_v26, %v384_v55 }
  0xab   : > { %878 = vpow2.f32 %v498_v61  ;;  %v510_v19 = vmul.f32 1.442695, %v456_v8  ;;  %v379_v23 = vpop.xlane.xlu0 %378 }
  0xac   : > { %880 = vpow2.f32 %v500_v59  ;;  %v512_v34 = vmul.f32 1.442695, %v457_v15  ;;  %v514_v9 = vmul.f32 1.442695, %v458_v17  ;;  %v453_v10 = vsub.f32 %v1092_v32, %v379_v23 }
  0xad   : > { %882 = vpow2.f32 %v502_v7  ;;  %v454_v11 = vsub.f32 %v1096_v36, %v379_v23  ;;  %v455_v35 = vsub.f32 %v1098_v37, %v379_v23  ;;  %v389_v43 = vpop.xlane.xlu1 %388 }
  0xae   : > { %884 = vpow2.f32 %v510_v19  ;;  %v504_v20 = vmul.f32 1.442695, %v453_v10  ;;  %v459_v21 = vsub.f32 %v1110_v46, %v389_v43  ;;  %v460_v26 = vsub.f32 %v1112_v47, %v389_v43 }
  0xaf   : > { %886 = vpow2.f32 %v512_v34  ;;  %v506_v44 = vmul.f32 1.442695, %v454_v11  ;;  %v508_v51 = vmul.f32 1.442695, %v455_v35  ;;  %v461_v45 = vsub.f32 %v1114_v48, %v389_v43  ;;  %v394_v54 = vpop.xlane.xlu0 %393 }
  0xb0   : > { %888 = vpow2.f32 %v514_v9  ;;  %v516_v32 = vmul.f32 1.442695, %v459_v21  ;;  %v462_v55 = vsub.f32 %v1125_v57, %v394_v54  ;;  %v518_v36 = vmul.f32 1.442695, %v460_v26 }
  0xb1   : > { %890 = vpow2.f32 %v504_v20  ;;  %v463_v37 = vsub.f32 %v1127_v58, %v394_v54  ;;  %v464_v61 = vsub.f32 %v1131_v62, %v394_v54  ;;  %v399_v59 = vpop.xlane.xlu1 %398  ;;  %v520_v46 = vmul.f32 1.442695, %v461_v45 }
  0xb2   : > { %892 = vpow2.f32 %v506_v44  ;;  %v465_v47 = vsub.f32 %v1140_v4, %v399_v59  ;;  %v522_v7 = vmul.f32 1.442695, %v462_v55  ;;  %v466_v48 = vsub.f32 %v1142_v5, %v399_v59 }
  0xb3   : > { %894 = vpow2.f32 %v508_v51  ;;  %v524_v8 = vmul.f32 1.442695, %v463_v37  ;;  %v467_v15 = vsub.f32 %v1146_v12, %v399_v59  ;;  %v526_v58 = vmul.f32 1.442695, %v464_v61 }
  0xb4   : > { %896 = vpow2.f32 %v516_v32  ;;  %v404_v57 = vpop.xlane.xlu0 %403  ;;  %v528_v4 = vmul.f32 1.442695, %v465_v47  ;;  %v530_v12 = vmul.f32 1.442695, %v466_v48 }
  0xb5   : > { %v1325_v17 = vpop.eup %878  ;;  %898 = vpow2.f32 %v518_v36  ;;  %v468_v62 = vsub.f32 %v1155_v18, %v404_v57  ;;  %v469_v19 = vsub.f32 %v1159_v24, %v404_v57  ;;  %v470_v34 = vsub.f32 %v1161_v25, %v404_v57 }
  0xb6   : > { %v1329_v23 = vpop.eup %880  ;;  %900 = vpow2.f32 %v520_v46  ;;  %v409_v5 = vpop.xlane.xlu1 %408  ;;  %v532_v35 = vmul.f32 1.442695, %v467_v15 }
  0xb7   : > { %v1332_v9 = vpop.eup %882  ;;  %902 = vpow2.f32 %v522_v7  ;;  %v471_v10 = vsub.f32 %v1173_v38, %v409_v5  ;;  %v472_v18 = vsub.f32 %v1175_v39, %v409_v5  ;;  %v534_v20 = vmul.f32 1.442695, %v468_v62 }
  0xb8   : > { %v1335_v11 = vpop.eup %884  ;;  %904 = vpow2.f32 %v524_v8  ;;  %v414_v24 = vpop.xlane.xlu0 %413  ;;  %v536_v21 = vmul.f32 1.442695, %v469_v19  ;;  %v473_v25 = vsub.f32 %v1177_v40, %v409_v5  ;;  %v538_v44 = vmul.f32 1.442695, %v470_v34 }
  0xb9   : > { %v1338_v43 = vpop.eup %886  ;;  %906 = vpow2.f32 %v526_v58  ;;  %v474_v38 = vsub.f32 %v1188_v52, %v414_v24  ;;  %v475_v51 = vsub.f32 %v1190_v53, %v414_v24  ;;  %v540_v39 = vmul.f32 1.442695, %v471_v10 }
  0xba   : > { %v1341_v26 = vpop.eup %888  ;;  %908 = vpow2.f32 %v528_v4  ;;  %v476_v54 = vsub.f32 %v1195_v60, %v414_v24  ;;  %v594_v55 = vadd.f32 %v1329_v23, %v1325_v17  ;;  %v542_v40 = vmul.f32 1.442695, %v472_v18 }
  0xbb   : > { %v1345_v45 = vpop.eup %890  ;;  %910 = vpow2.f32 %v530_v12  ;;  %v419_v32 = vpop.xlane.xlu1 %418  ;;  %v544_v53 = vmul.f32 1.442695, %v473_v25  ;;  %v595_v60 = vsel %vm370_vm0, %v1332_v9, 0.0  ;;  %v546_v7 = vmul.f32 1.442695, %v474_v38 }
  0xbc   : > { %v1350_v36 = vpop.eup %892  ;;  %912 = vpow2.f32 %v532_v35  ;;  %v477_v37 = vsub.f32 %v1204_v3, %v419_v32  ;;  %v478_v52 = vsub.f32 %v1208_v13, %v419_v32  ;;  %v479_v59 = vsub.f32 %v1210_v14, %v419_v32 }
  0xbd   : > { %v1354_v61 = vpop.eup %894  ;;  %914 = vpow2.f32 %v534_v20  ;;  %v424_v46 = vpop.xlane.xlu0 %423  ;;  %v548_v48 = vmul.f32 1.442695, %v475_v51  ;;  %v596_v8 = vadd.f32 %v595_v60, %v594_v55  ;;  %v550_v3 = vmul.f32 1.442695, %v476_v54 }
  0xbe   : > { %v1359_v47 = vpop.eup %896  ;;  %916 = vpow2.f32 %v536_v21  ;;  %v480_v13 = vsub.f32 %v1222_v29, %v424_v46  ;;  %v481_v57 = vsub.f32 %v1224_v30, %v424_v46  ;;  %v552_v62 = vmul.f32 1.442695, %v477_v37 }
  0xbf   : > { %v1361_v15 = vpop.eup %898  ;;  %918 = vpow2.f32 %v538_v44  ;;  %v429_v58 = vpop.xlane.xlu1 %428  ;;  %v554_v19 = vmul.f32 1.442695, %v478_v52  ;;  %597 = vadd.xlane.f32.xlu0 %v596_v8  ;;  %v604_v4 = vadd.f32 %v1338_v43, %v1335_v11  ;;  %v556_v5 = vmul.f32 1.442695, %v479_v59 }
  0xc0   : > { %v1365_v14 = vpop.eup %900  ;;  %920 = vpow2.f32 %v540_v39  ;;  %v482_v12 = vsub.f32 %v1226_v31, %v424_v46  ;;  %v483_v29 = vsub.f32 %v1237_v49, %v429_v58  ;;  %v558_v35 = vmul.f32 1.442695, %v480_v13 }
  0xc1   : > { %v1369_v34 = vpop.eup %902  ;;  %922 = vpow2.f32 %v542_v40  ;;  %v434_v10 = vpop.xlane.xlu0 %433  ;;  %v484_v18 = vsub.f32 %v1239_v50, %v429_v58  ;;  %v485_v24 = vsub.f32 %v1243_v56, %v429_v58  ;;  %v560_v21 = vmul.f32 1.442695, %v481_v57 }
  0xc2   : > { %v1373_v30 = vpop.eup %904  ;;  %924 = vpow2.f32 %v544_v53  ;;  %v605_v25 = vsel %vm370_vm0, %v1341_v26, 0.0  ;;  %v599_v31 = vadd.f32 %v1350_v36, %v1345_v45  ;;  %v600_v38 = vsel %vm370_vm0, %v1354_v61, 0.0 }
  0xc3   : > { %v1377_v20 = vpop.eup %906  ;;  %926 = vpow2.f32 %v546_v7  ;;  %v606_v44 = vadd.f32 %v605_v25, %v604_v4  ;;  %v486_v50 = vsub.f32 %v1252_v2, %v434_v10  ;;  %v562_v39 = vmul.f32 1.442695, %v482_v12 }
  0xc4   : > { %v1383_v49 = vpop.eup %908  ;;  %928 = vpow2.f32 %v548_v48  ;;  %v439_v56 = vpop.xlane.xlu1 %438  ;;  %v601_v54 = vadd.f32 %v600_v38, %v599_v31  ;;  %v487_v32 = vsub.f32 %v1254_v6, %v434_v10  ;;  %v564_v40 = vmul.f32 1.442695, %v483_v29 }
  0xc5   : > { %v1388_v51 = vpop.eup %910  ;;  %930 = vpow2.f32 %v550_v3  ;;  %v566_v37 = vmul.f32 1.442695, %v484_v18  ;;  %v568_v52 = vmul.f32 1.442695, %v485_v24  ;;  %607 = vadd.xlane.f32.xlu0 %v606_v44  ;;  %v488_v2 = vsub.f32 %v1258_v16, %v434_v10 }
  0xc6   : > { %v1391_v55 = vpop.eup %912  ;;  %932 = vpow2.f32 %v552_v62  ;;  %602 = vadd.xlane.f32.xlu1 %v601_v54  ;;  %v570_v59 = vmul.f32 1.442695, %v486_v50  ;;  %v489_v60 = vsub.f32 %v1267_v28, %v439_v56  ;;  %v444_v46 = vpop.xlane.xlu0 %443  ;;  %v490_v6 = vsub.f32 %v1271_v41, %v439_v56 }
  0xc7   : > { %v1393_v53 = vpop.eup %914  ;;  %934 = vpow2.f32 %v554_v19  ;;  %v491_v48 = vsub.f32 %v1273_v42, %v439_v56  ;;  %v609_v8 = vadd.f32 %v1361_v15, %v1359_v47  ;;  %v572_v13 = vmul.f32 1.442695, %v487_v32 }
  0xc8   : > { %v1397_v7 = vpop.eup %916  ;;  %936 = vpow2.f32 %v556_v5  ;;  %v610_v16 = vsel %vm370_vm0, %v1365_v14, 0.0  ;;  %v614_v28 = vadd.f32 %v1373_v30, %v1369_v34  ;;  %v615_v41 = vsel %vm370_vm0, %v1377_v20, 0.0  ;;  %v449_v62 = vpop.xlane.xlu1 %448 }
  0xc9   : > { %v1403_v3 = vpop.eup %918  ;;  %938 = vpow2.f32 %v558_v35  ;;  %v611_v58 = vadd.f32 %v610_v16, %v609_v8  ;;  %v492_v42 = vsub.f32 %v1285_v63, %v444_v46  ;;  %v574_v4 = vmul.f32 1.442695, %v488_v2 }
  0xca   : > { %v1409_v57 = vpop.eup %920  ;;  %940 = vpow2.f32 %v560_v21  ;;  %v616_v5 = vadd.f32 %v615_v41, %v614_v28  ;;  %v493_v12 = vsub.f32 %v1287_v0, %v444_v46  ;;  %v576_v10 = vmul.f32 1.442695, %v489_v60 }
  0xcb   : > { %v1414_v19 = vpop.eup %922  ;;  %942 = vpow2.f32 %v562_v39  ;;  %v578_v35 = vmul.f32 1.442695, %v490_v6  ;;  %v580_v18 = vmul.f32 1.442695, %v491_v48  ;;  %612 = vadd.xlane.f32.xlu1 %v611_v58  ;;  %v494_v63 = vsub.f32 %v1289_v1, %v444_v46 }
  0xcc   : > { %v1417_v29 = vpop.eup %924  ;;  %944 = vpow2.f32 %v564_v40  ;;  %617 = vadd.xlane.f32.xlu0 %v616_v5  ;;  %v582_v21 = vmul.f32 1.442695, %v492_v42  ;;  %v495_v25 = vsub.f32 %v1297_v27, %v449_v62  ;;  %v584_v0 = vmul.f32 1.442695, %v493_v12 }
  0xcd   : > { %v1419_v24 = vpop.eup %926  ;;  %946 = vpow2.f32 %v566_v37  ;;  %v496_v44 = vsub.f32 %v1299_v22, %v449_v62  ;;  %v619_v38 = vadd.f32 %v1388_v51, %v1383_v49  ;;  %v497_v56 = vsub.f32 %v1301_v33, %v449_v62 }
  0xce   : > { %v1423_v31 = vpop.eup %928  ;;  %948 = vpow2.f32 %v568_v52  ;;  %v620_v1 = vsel %vm370_vm0, %v1391_v55, 0.0  ;;  %v624_v27 = vadd.f32 %v1397_v7, %v1393_v53  ;;  %v625_v22 = vsel %vm370_vm0, %v1403_v3, 0.0 }
  0xcf   : > { %v1428_v50 = vpop.eup %930  ;;  %950 = vpow2.f32 %v570_v59  ;;  %v621_v54 = vadd.f32 %v620_v1, %v619_v38  ;;  %v629_v32 = vadd.f32 %v1414_v19, %v1409_v57  ;;  %v630_v37 = vsel %vm370_vm0, %v1417_v29, 0.0 }
  0xd0   : > { %v1435_v39 = vpop.eup %932  ;;  %952 = vpow2.f32 %v572_v13  ;;  %v626_v33 = vadd.f32 %v625_v22, %v624_v27  ;;  %v634_v52 = vadd.f32 %v1423_v31, %v1419_v24  ;;  %v635_v60 = vsel %vm370_vm0, %v1428_v50, 0.0 }
  0xd1   : > { %v1441_v40 = vpop.eup %934  ;;  %954 = vpow2.f32 %v574_v4  ;;  %622 = vadd.xlane.f32.xlu1 %v621_v54  ;;  %v631_v59 = vadd.f32 %v630_v37, %v629_v32  ;;  %v586_v48 = vmul.f32 1.442695, %v494_v63  ;;  %v588_v28 = vmul.f32 1.442695, %v495_v25 }
  0xd2   : > { %v1447_v2 = vpop.eup %936  ;;  %956 = vpow2.f32 %v576_v10  ;;  %v639_v46 = vadd.f32 %v1441_v40, %v1435_v39  ;;  %627 = vadd.xlane.f32.xlu0 %v626_v33  ;;  %v636_v8 = vadd.f32 %v635_v60, %v634_v52  ;;  %v590_v41 = vmul.f32 1.442695, %v496_v44 }
  0xd3   : > { %v1453_v6 = vpop.eup %938  ;;  %958 = vpow2.f32 %v578_v35  ;;  %v640_v13 = vsel %vm370_vm0, %v1447_v2, 0.0  ;;  %v592_v4 = vmul.f32 1.442695, %v497_v56 }
  0xd4   : > { %v1457_v16 = vpop.eup %940  ;;  %960 = vpow2.f32 %v580_v18  ;;  %v641_v5 = vadd.f32 %v640_v13, %v639_v46 }
  0xd5   : > { %v1459_v58 = vpop.eup %942  ;;  %962 = vpow2.f32 %v582_v21  ;;  %v644_v42 = vadd.f32 %v1457_v16, %v1453_v6  ;;  %632 = vadd.xlane.f32.xlu1 %v631_v59 }
  0xd6   : > { %v1463_v62 = vpop.eup %944  ;;  %964 = vpow2.f32 %v584_v0  ;;  %v645_v12 = vsel %vm370_vm0, %v1459_v58, 0.0  ;;  %637 = vadd.xlane.f32.xlu0 %v636_v8 }
  0xd7   : > { %v1467_v10 = vpop.eup %946  ;;  %966 = vpow2.f32 %v586_v48  ;;  %v646_v35 = vadd.f32 %v645_v12, %v644_v42 }
  0xd8   : > { %v1469_v18 = vpop.eup %948  ;;  %968 = vpow2.f32 %v588_v28  ;;  %v649_v63 = vadd.f32 %v1467_v10, %v1463_v62 }
  0xd9   : > { %v1473_v21 = vpop.eup %950  ;;  %970 = vpow2.f32 %v590_v41  ;;  %v650_v25 = vsel %vm370_vm0, %v1469_v18, 0.0  ;;  %642 = vadd.xlane.f32.xlu1 %v641_v5 }
  0xda   : > { %v1477_v0 = vpop.eup %952  ;;  %972 = vpow2.f32 %v592_v4  ;;  %v651_v44 = vadd.f32 %v650_v25, %v649_v63  ;;  %647 = vadd.xlane.f32.xlu0 %v646_v35 }
  0xdb   : > { %v1479_v38 = vpop.eup %954  ;;  %v654_v56 = vadd.f32 %v1477_v0, %v1473_v21 }
  0xdc   : > { %v1483_v1 = vpop.eup %956  ;;  %v655_v27 = vsel %vm370_vm0, %v1479_v38, 0.0 }
  0xdd   : > { %v1487_v54 = vpop.eup %958  ;;  %v656_v22 = vadd.f32 %v655_v27, %v654_v56  ;;  %652 = vadd.xlane.f32.xlu1 %v651_v44 }
  0xde   : > { %v1489_v32 = vpop.eup %960  ;;  %v659_v33 = vadd.f32 %v1487_v54, %v1483_v1 }
  0xdf   : > { %v1493_v37 = vpop.eup %962  ;;  %657 = vadd.xlane.f32.xlu0 %v656_v22  ;;  %v660_v52 = vsel %vm370_vm0, %v1489_v32, 0.0 }
  0xe0   : > { %v1497_v59 = vpop.eup %964  ;;  %v661_v60 = vadd.f32 %v660_v52, %v659_v33 }
  0xe1   : > { %v1499_v46 = vpop.eup %966  ;;  %v664_v48 = vadd.f32 %v1497_v59, %v1493_v37 }
  0xe2   : > { %v1503_v8 = vpop.eup %968  ;;  %662 = vadd.xlane.f32.xlu1 %v661_v60  ;;  %v665_v13 = vsel %vm370_vm0, %v1499_v46, 0.0 }
  0xe3   : > { %v1507_v28 = vpop.eup %970  ;;  %v666_v41 = vadd.f32 %v665_v13, %v664_v48 }
  0xe4   : > { %v1509_v42 = vpop.eup %972  ;;  %v669_v4 = vadd.f32 %v1507_v28, %v1503_v8 }
  0xe5   : > { %667 = vadd.xlane.f32.xlu0 %v666_v41  ;;  %v670_v5 = vsel %vm370_vm0, %v1509_v42, 0.0 }
  0xe6   : > { %v671_v12 = vadd.f32 %v670_v5, %v669_v4 }
  0xe8   : > { %672 = vadd.xlane.f32.xlu1 %v671_v12 }
 0x14c   : > { %v598_v35 = vpop.xlane.xlu0 %597 }
 0x14d   : > { %974 = vrcp.f32 %v598_v35 }
 0x152   : > { %v608_v63 = vpop.xlane.xlu0 %607 }
 0x153   : > { %v603_v25 = vpop.xlane.xlu1 %602  ;;  %976 = vrcp.f32 %v608_v63 }
 0x154   : > { %978 = vrcp.f32 %v603_v25 }
 0x157   : > { %v975_v44 = vpop.eup %974 }
 0x158   : > { %v675_v56 = vmul.f32 %v975_v44, %v1325_v17  ;;  %v676_v27 = vmul.f32 %v975_v44, %v1329_v23  ;;  %v677_v22 = vmul.f32 %v975_v44, %v1332_v9  ;;  %v613_v33 = vpop.xlane.xlu1 %612 }
 0x159   : > { %980 = vrcp.f32 %v613_v33  ;;  %v618_v52 = vpop.xlane.xlu0 %617 }
 0x15a   : > { %738 = vst [vmem:[%s1519_s21] sm:$0xff] %v675_v56  ;;  %739 = vst [vmem:[%s1519_s21 + $0x8] sm:$0xff] %v676_v27  ;;  %982 = vrcp.f32 %v618_v52 }
 0x15b   : > { %740 = vst.msk [vmem:[%s1519_s21 + $0x10] sm:$0xff] %vm370_vm0, %v677_v22 }
 0x15d   : > { %v977_v60 = vpop.eup %976 }
 0x15e   : > { %v979_v48 = vpop.eup %978  ;;  %v683_v17 = vmul.f32 %v977_v60, %v1335_v11  ;;  %v684_v23 = vmul.f32 %v977_v60, %v1338_v43  ;;  %v685_v9 = vmul.f32 %v977_v60, %v1341_v26  ;;  %v623_v13 = vpop.xlane.xlu1 %622 }
 0x15f   : > { %v679_v41 = vmul.f32 %v979_v48, %v1345_v45  ;;  %v680_v4 = vmul.f32 %v979_v48, %v1350_v36  ;;  %v681_v5 = vmul.f32 %v979_v48, %v1354_v61  ;;  %984 = vrcp.f32 %v623_v13  ;;  %v628_v12 = vpop.xlane.xlu0 %627 }
 0x160   : > { %744 = vst [vmem:[%s1519_s21 + $0x30] sm:$0xff] %v683_v17  ;;  %745 = vst [vmem:[%s1519_s21 + $0x38] sm:$0xff] %v684_v23  ;;  %986 = vrcp.f32 %v628_v12 }
 0x161   : > { %746 = vst.msk [vmem:[%s1519_s21 + $0x40] sm:$0xff] %vm370_vm0, %v685_v9  ;;  %741 = vst [vmem:[%s1519_s21 + $0x18] sm:$0xff] %v679_v41 }
 0x162   : > { %742 = vst [vmem:[%s1519_s21 + $0x20] sm:$0xff] %v680_v4  ;;  %743 = vst.msk [vmem:[%s1519_s21 + $0x28] sm:$0xff] %vm370_vm0, %v681_v5  ;;  %v633_v11 = vpop.xlane.xlu1 %632 }
 0x163   : > { %v981_v43 = vpop.eup %980  ;;  %988 = vrcp.f32 %v633_v11  ;;  %v638_v26 = vpop.xlane.xlu0 %637 }
 0x164   : > { %v983_v45 = vpop.eup %982  ;;  %v687_v36 = vmul.f32 %v981_v43, %v1359_v47  ;;  %v688_v61 = vmul.f32 %v981_v43, %v1361_v15  ;;  %v689_v35 = vmul.f32 %v981_v43, %v1365_v14  ;;  %990 = vrcp.f32 %v638_v26 }
 0x165   : > { %v691_v63 = vmul.f32 %v983_v45, %v1369_v34  ;;  %v692_v25 = vmul.f32 %v983_v45, %v1373_v30  ;;  %v693_v44 = vmul.f32 %v983_v45, %v1377_v20 }
 0x166   : > { %747 = vst [vmem:[%s1519_s21 + $0x48] sm:$0xff] %v687_v36  ;;  %748 = vst [vmem:[%s1519_s21 + $0x50] sm:$0xff] %v688_v61  ;;  %v643_v56 = vpop.xlane.xlu1 %642 }
 0x167   : > { %749 = vst.msk [vmem:[%s1519_s21 + $0x58] sm:$0xff] %vm370_vm0, %v689_v35  ;;  %750 = vst [vmem:[%s1519_s21 + $0x60] sm:$0xff] %v691_v63  ;;  %992 = vrcp.f32 %v643_v56  ;;  %v648_v47 = vpop.xlane.xlu0 %647 }
 0x168   : > { %751 = vst [vmem:[%s1519_s21 + $0x68] sm:$0xff] %v692_v25  ;;  %752 = vst.msk [vmem:[%s1519_s21 + $0x70] sm:$0xff] %vm370_vm0, %v693_v44  ;;  %994 = vrcp.f32 %v648_v47 }
 0x169   : > { %v985_v15 = vpop.eup %984 }
 0x16a   : > { %v987_v14 = vpop.eup %986  ;;  %v695_v34 = vmul.f32 %v985_v15, %v1383_v49  ;;  %v696_v30 = vmul.f32 %v985_v15, %v1388_v51  ;;  %v697_v20 = vmul.f32 %v985_v15, %v1391_v55  ;;  %v653_v27 = vpop.xlane.xlu1 %652 }
 0x16b   : > { %v699_v22 = vmul.f32 %v987_v14, %v1393_v53  ;;  %v700_v33 = vmul.f32 %v987_v14, %v1397_v7  ;;  %v701_v52 = vmul.f32 %v987_v14, %v1403_v3  ;;  %996 = vrcp.f32 %v653_v27 }
 0x16c   : > { %v658_v60 = vpop.xlane.xlu0 %657  ;;  %753 = vst [vmem:[%s1519_s21 + $0x78] sm:$0xff] %v695_v34  ;;  %754 = vst [vmem:[%s1519_s21 + $0x80] sm:$0xff] %v696_v30 }
 0x16d   : > { %755 = vst.msk [vmem:[%s1519_s21 + $0x88] sm:$0xff] %vm370_vm0, %v697_v20  ;;  %998 = vrcp.f32 %v658_v60  ;;  %v989_v49 = vpop.eup %988  ;;  %756 = vst [vmem:[%s1519_s21 + $0x90] sm:$0xff] %v699_v22 }
 0x16e   : > { %757 = vst [vmem:[%s1519_s21 + $0x98] sm:$0xff] %v700_v33  ;;  %758 = vst.msk [vmem:[%s1519_s21 + $0xa0] sm:$0xff] %vm370_vm0, %v701_v52  ;;  %v991_v51 = vpop.eup %990  ;;  %v703_v55 = vmul.f32 %v989_v49, %v1409_v57  ;;  %v704_v53 = vmul.f32 %v989_v49, %v1414_v19  ;;  %v705_v7 = vmul.f32 %v989_v49, %v1417_v29 }
 0x16f   : > { %v663_v3 = vpop.xlane.xlu1 %662  ;;  %v707_v48 = vmul.f32 %v991_v51, %v1419_v24  ;;  %v708_v17 = vmul.f32 %v991_v51, %v1423_v31  ;;  %v709_v23 = vmul.f32 %v991_v51, %v1428_v50 }
 0x170   : > { %1000 = vrcp.f32 %v663_v3  ;;  %759 = vst [vmem:[%s1519_s21 + $0xa8] sm:$0xff] %v703_v55  ;;  %760 = vst [vmem:[%s1519_s21 + $0xb0] sm:$0xff] %v704_v53 }
 0x171   : > { %761 = vst.msk [vmem:[%s1519_s21 + $0xb8] sm:$0xff] %vm370_vm0, %v705_v7  ;;  %v993_v57 = vpop.eup %992  ;;  %762 = vst [vmem:[%s1519_s21 + $0xc0] sm:$0xff] %v707_v48 }
 0x172   : > { %763 = vst [vmem:[%s1519_s21 + $0xc8] sm:$0xff] %v708_v17  ;;  %764 = vst.msk [vmem:[%s1519_s21 + $0xd0] sm:$0xff] %vm370_vm0, %v709_v23  ;;  %v668_v19 = vpop.xlane.xlu0 %667  ;;  %v995_v29 = vpop.eup %994  ;;  %v711_v24 = vmul.f32 %v993_v57, %v1435_v39  ;;  %v712_v31 = vmul.f32 %v993_v57, %v1441_v40  ;;  %v713_v50 = vmul.f32 %v993_v57, %v1447_v2 }
 0x173   : > { %1002 = vrcp.f32 %v668_v19  ;;  %v715_v9 = vmul.f32 %v995_v29, %v1453_v6  ;;  %v716_v13 = vmul.f32 %v995_v29, %v1457_v16  ;;  %v717_v41 = vmul.f32 %v995_v29, %v1459_v58 }
 0x174   : > { %765 = vst [vmem:[%s1519_s21 + $0xd8] sm:$0xff] %v711_v24  ;;  %766 = vst [vmem:[%s1519_s21 + $0xe0] sm:$0xff] %v712_v31 }
 0x175   : > { %767 = vst.msk [vmem:[%s1519_s21 + $0xe8] sm:$0xff] %vm370_vm0, %v713_v50  ;;  %v673_v4 = vpop.xlane.xlu1 %672  ;;  %v997_v39 = vpop.eup %996  ;;  %768 = vst [vmem:[%s1519_s21 + $0xf0] sm:$0xff] %v715_v9 }
 0x176   : > { %769 = vst [vmem:[%s1519_s21 + $0xf8] sm:$0xff] %v716_v13  ;;  %770 = vst.msk [vmem:[%s1519_s21 + $0x100] sm:$0xff] %vm370_vm0, %v717_v41  ;;  %1004 = vrcp.f32 %v673_v4  ;;  %v719_v2 = vmul.f32 %v997_v39, %v1463_v62  ;;  %v720_v6 = vmul.f32 %v997_v39, %v1467_v10  ;;  %v721_v16 = vmul.f32 %v997_v39, %v1469_v18 }
 0x177   : > { %v999_v40 = vpop.eup %998 }
 0x178   : > { %v723_v58 = vmul.f32 %v999_v40, %v1473_v21  ;;  %v724_v5 = vmul.f32 %v999_v40, %v1477_v0  ;;  %v725_v12 = vmul.f32 %v999_v40, %v1479_v38  ;;  %771 = vst [vmem:[%s1519_s21 + $0x108] sm:$0xff] %v719_v2  ;;  %772 = vst [vmem:[%s1519_s21 + $0x110] sm:$0xff] %v720_v6 }
 0x179   : > { %773 = vst.msk [vmem:[%s1519_s21 + $0x118] sm:$0xff] %vm370_vm0, %v721_v16 }
 0x17a   : > { %v1001_v11 = vpop.eup %1000  ;;  %774 = vst [vmem:[%s1519_s21 + $0x120] sm:$0xff] %v723_v58  ;;  %775 = vst [vmem:[%s1519_s21 + $0x128] sm:$0xff] %v724_v5 }
 0x17b   : > { %776 = vst.msk [vmem:[%s1519_s21 + $0x130] sm:$0xff] %vm370_vm0, %v725_v12  ;;  %v727_v62 = vmul.f32 %v1001_v11, %v1483_v1  ;;  %v728_v10 = vmul.f32 %v1001_v11, %v1487_v54  ;;  %v729_v18 = vmul.f32 %v1001_v11, %v1489_v32 }
 0x17d   : > { %v1003_v21 = vpop.eup %1002  ;;  %777 = vst [vmem:[%s1519_s21 + $0x138] sm:$0xff] %v727_v62  ;;  %778 = vst [vmem:[%s1519_s21 + $0x140] sm:$0xff] %v728_v10 }
 0x17e   : > { %779 = vst.msk [vmem:[%s1519_s21 + $0x148] sm:$0xff] %vm370_vm0, %v729_v18  ;;  %v731_v0 = vmul.f32 %v1003_v21, %v1493_v37  ;;  %v732_v38 = vmul.f32 %v1003_v21, %v1497_v59  ;;  %v733_v43 = vmul.f32 %v1003_v21, %v1499_v46 }
 0x180   : > { %v1005_v26 = vpop.eup %1004  ;;  %780 = vst [vmem:[%s1519_s21 + $0x150] sm:$0xff] %v731_v0  ;;  %781 = vst [vmem:[%s1519_s21 + $0x158] sm:$0xff] %v732_v38 }
 0x181   : > { %782 = vst.msk [vmem:[%s1519_s21 + $0x160] sm:$0xff] %vm370_vm0, %v733_v43  ;;  %v735_v1 = vmul.f32 %v1005_v26, %v1503_v8  ;;  %v736_v54 = vmul.f32 %v1005_v26, %v1507_v28  ;;  %v737_v32 = vmul.f32 %v1005_v26, %v1509_v42 }
 0x183   : > { %783 = vst [vmem:[%s1519_s21 + $0x168] sm:$0xff] %v735_v1  ;;  %784 = vst [vmem:[%s1519_s21 + $0x170] sm:$0xff] %v736_v54 }
 0x184   : > { %785 = vst.msk [vmem:[%s1519_s21 + $0x178] sm:$0xff] %vm370_vm0, %v737_v32 }
 0x185 PF: > { %s12_s9 = sadd.s32 1, %s1012_s9  }
 0x186   : > { %p9_p4 = scmp.ge.s32.totalorder %s12_s9, 6  }
 0x188   :  { %11 = sbr.rel (!%p9_p4) target bundleno = 1 (0x1), region = 61 }

</bundles_post_ra>
